<compile_context>
chip_gen: v7x
topology: tpu7x:2x2x1
jax: 0.10.0
libtpu: 0.0.40
codegen_flags: <defaults>
</compile_context>

<pallas_src>
import jax
import jax.numpy as jnp
from jax.experimental import pallas as pl
from jax.experimental.pallas import tpu as pltpu
from functools import partial

# Older JAX releases named this TPUCompilerParams; keep a tiny compat shim.
_CompilerParams = (getattr(pltpu, "CompilerParams", None)
                   or getattr(pltpu, "TPUCompilerParams"))


def _gelu_tanh(x):
    # GELU with tanh approximation (matches nn.GELU(approximate='tanh')).
    c = 0.7978845608028654  # sqrt(2/pi)
    return 0.5 * x * (1.0 + jnp.tanh(c * (x + 0.044715 * x * x * x)))


def _round_up(n, m):
    return ((n + m - 1) // m) * m


def _tpu_vmem_bytes():
    try:
        return int(pltpu.get_tpu_info().vmem_capacity_bytes)
    except Exception:
        return 64 << 20  # conservative default (v7x per-TC VMEM)


# --------------------------------------------------------------------------
# Kernels
# --------------------------------------------------------------------------
def _mlp_resident_kernel(x_ref, w1_ref, b1_ref, w2_ref, b2_ref, o_ref, *, th):
    """Weight-resident path: full W1/W2 in VMEM (constant index map -> fetched
    once per call).  Hidden dim chunked inside the kernel to bound f32 temps."""
    x = x_ref[...]
    H = w1_ref.shape[1]
    acc = jnp.zeros((x_ref.shape[0], o_ref.shape[1]), jnp.float32)
    for h0 in range(0, H, th):  # static unroll; th divides H
        h = jnp.dot(x, w1_ref[:, h0:h0 + th],
                    preferred_element_type=jnp.float32)
        h = _gelu_tanh(h + b1_ref[:, h0:h0 + th].astype(jnp.float32))
        acc = acc + jnp.dot(h.astype(w2_ref.dtype), w2_ref[h0:h0 + th, :],
                            preferred_element_type=jnp.float32)
    o_ref[...] = (acc + b2_ref[...].astype(jnp.float32)).astype(o_ref.dtype)


def _mlp_streaming_kernel(x_ref, w1_ref, b1_ref, w2_ref, b2_ref, o_ref,
                          acc_ref):
    """Streaming path: 2-D grid (row tiles, H chunks); weights streamed per k,
    partial products accumulated in a (tm, C) f32 VMEM scratch."""
    k = pl.program_id(1)

    @pl.when(k == 0)
    def _init():
        acc_ref[...] = jnp.zeros_like(acc_ref)

    h = jnp.dot(x_ref[...], w1_ref[...], preferred_element_type=jnp.float32)
    h = _gelu_tanh(h + b1_ref[...].astype(jnp.float32))
    acc_ref[...] += jnp.dot(h.astype(w2_ref.dtype), w2_ref[...],
                            preferred_element_type=jnp.float32)

    @pl.when(k == pl.num_programs(1) - 1)
    def _finalize():
        o_ref[...] = (acc_ref[...]
                      + b2_ref[...].astype(jnp.float32)).astype(o_ref.dtype)


# --------------------------------------------------------------------------
# Wrapper
# --------------------------------------------------------------------------
def mlp_forward(x, w1, b1, w2, b2, *, mxu_dtype=jnp.bfloat16,
                _force_streaming=False, _force_th=None):
    """x: (B, T, C).  w1: (C, 4C), b1: (4C,), w2: (4C, C), b2: (C,).

    Weights use (in_features, out_features) layout (transpose of nn.Linear).
    mxu_dtype=bfloat16 feeds bf16 operands to the MXU with f32 accumulation;
    mxu_dtype=None keeps bit-faithful f32 semantics.
    """
    B, T, C = x.shape
    H = w1.shape[1]
    M = B * T
    out_dtype = x.dtype

    if mxu_dtype is not None:
        x = x.astype(mxu_dtype)
        w1 = w1.astype(mxu_dtype)
        w2 = w2.astype(mxu_dtype)

    x2d = x.reshape(M, C)
    b1_2d = b1.reshape(1, H)
    b2_2d = b2.reshape(1, C)

    op_bytes = x2d.dtype.itemsize
    out_bytes = jnp.zeros((), out_dtype).dtype.itemsize

    # ---- VMEM budget (v7x: 64 MiB/TC; v5e/v6e: 128 MiB) -------------------
    vmem_cap = _tpu_vmem_bytes()
    small_vmem = vmem_cap <= (64 << 20)
    vmem_budget = vmem_cap - (16 << 20)     # ~48 MiB on v7x, ~112 MiB on v6e
    vmem_limit = vmem_cap - (12 << 20)      # raise the scoped default

    # ---- Row tile tm: arithmetic-intensity knob ----------------------------
    # AI ~ tm FLOP / weight byte when weights are streamed; need ~1024 on
    # v5e/v6e to be MXU-bound, ~512 per-TC suffices on v7x (half the VMEM).
    tm_target = 512 if small_vmem else 1024          # multiples of 256 (MXU)
    if M >= tm_target:
        tm = tm_target
    else:
        tm = _round_up(M, 16)                        # 16: bf16 sublane packing
        if small_vmem and M >= 64:
            tm = _round_up(-(-M // 2), 16)           # >=2 tiles -> both v7x TCs
    tm = max(tm, 8)

    # ---- Hidden (reduction) chunk: multiple of 128 lanes, prefer >=256 -----
    if _force_th is not None:
        th = _force_th
    else:
        th = next((c for c in (1024, 512, 256, 128) if H % c == 0), H)

    # ---- Path selection ----------------------------------------------------
    resident_w_bytes = 2 * 2 * C * H * op_bytes       # W1+W2, double-buffered
    resident_tile_bytes = (2 * tm * C * op_bytes      # x blocks
                           + 2 * tm * C * out_bytes   # out blocks
                           + tm * C * 4               # f32 output accumulator
                           + 2 * tm * th * 4)         # f32 hidden-chunk temps
    use_resident = ((not _force_streaming)
                    and resident_w_bytes + resident_tile_bytes <= vmem_budget)

    if not use_resident:
        def stream_bytes(tm_, th_):
            return (2 * tm_ * C * op_bytes + 2 * tm_ * C * out_bytes
                    + 4 * C * th_ * op_bytes           # W1+W2 chunk buffers
                    + 2 * (th_ + C) * op_bytes         # bias buffers
                    + tm_ * C * 4 + tm_ * th_ * 4)     # f32 acc + h temp
        while stream_bytes(tm, th) > vmem_budget:
            if th > 128 and H % (th // 2) == 0:
                th //= 2
            elif tm > 256:
                tm -= 256
            elif tm > 16:
                tm = _round_up(tm // 2, 16)
            else:
                break

    M_pad = _round_up(M, tm)
    if M_pad != M:
        x2d = jnp.pad(x2d, ((0, M_pad - M), (0, 0)))
    n_row_tiles = M_pad // tm

    cparams = _CompilerParams(
        dimension_semantics=(("parallel",) if use_resident
                             else ("parallel", "arbitrary")),
        vmem_limit_bytes=int(vmem_limit))

    call_kwargs = {"compiler_params": cparams}
    if hasattr(pl, "CostEstimate"):
        w_streams = 1 if use_resident else n_row_tiles
        call_kwargs["cost_estimate"] = pl.CostEstimate(
            flops=4 * M_pad * C * H,
            transcendentals=M_pad * H,
            bytes_accessed=(M_pad * C * (op_bytes + out_bytes)
                            + 2 * C * H * op_bytes * w_streams))

    if use_resident:
        out = pl.pallas_call(
            partial(_mlp_resident_kernel, th=th),
            out_shape=jax.ShapeDtypeStruct((M_pad, C), out_dtype),
            grid_spec=pltpu.PrefetchScalarGridSpec(
                num_scalar_prefetch=0,
                grid=(n_row_tiles,),
                in_specs=[
                    pl.BlockSpec((tm, C), lambda i: (i, 0)),   # x row tile
                    pl.BlockSpec((C, H), lambda i: (0, 0)),    # W1 (resident)
                    pl.BlockSpec((1, H), lambda i: (0, 0)),    # b1
                    pl.BlockSpec((H, C), lambda i: (0, 0)),    # W2 (resident)
                    pl.BlockSpec((1, C), lambda i: (0, 0)),    # b2
                ],
                out_specs=pl.BlockSpec((tm, C), lambda i: (i, 0)),
            ),
            **call_kwargs,
        )(x2d, w1, b1_2d, w2, b2_2d)
    else:
        out = pl.pallas_call(
            _mlp_streaming_kernel,
            out_shape=jax.ShapeDtypeStruct((M_pad, C), out_dtype),
            grid_spec=pltpu.PrefetchScalarGridSpec(
                num_scalar_prefetch=0,
                grid=(n_row_tiles, H // th),
                in_specs=[
                    pl.BlockSpec((tm, C), lambda i, k: (i, 0)),   # x row tile
                    pl.BlockSpec((C, th), lambda i, k: (0, k)),   # W1 chunk
                    pl.BlockSpec((1, th), lambda i, k: (0, k)),   # b1 chunk
                    pl.BlockSpec((th, C), lambda i, k: (k, 0)),   # W2 chunk
                    pl.BlockSpec((1, C), lambda i, k: (0, 0)),    # b2
                ],
                out_specs=pl.BlockSpec((tm, C), lambda i, k: (i, 0)),
                scratch_shapes=[pltpu.VMEM((tm, C), jnp.float32)],
            ),
            **call_kwargs,
        )(x2d, w1, b1_2d, w2, b2_2d)

    return out[:M].reshape(B, T, C)


# --------------------------------------------------------------------------
# Reference + self-test
# --------------------------------------------------------------------------
def _ref_mlp(x, w1, b1, w2, b2):
    h = jnp.dot(x, w1, precision=jax.lax.Precision.HIGHEST) + b1
    h = _gelu_tanh(h)
    return jnp.dot(h, w2, precision=jax.lax.Precision.HIGHEST) + b2


if __name__ == "__main__":
    # Config consistent with the module: n_embd=32 -> hidden=128, batch=2, seq=8.
    B, T, C = 2, 8, 32
    H = 4 * C

    key = jax.random.PRNGKey(0)
    kx, k1, k2, k3, k4 = jax.random.split(key, 5)
    x = jax.random.normal(kx, (B, T, C), dtype=jnp.float32)
    # Synthetic parameters in (in_features, out_features) layout.
    w1 = jax.random.normal(k1, (C, H), dtype=jnp.float32) * 0.02
    b1 = jax.random.normal(k2, (H,), dtype=jnp.float32) * 0.02
    w2 = jax.random.normal(k3, (H, C), dtype=jnp.float32) * 0.02
    b2 = jax.random.normal(k4, (C,), dtype=jnp.float32) * 0.02

    y_ref = _ref_mlp(x, w1, b1, w2, b2)

    # 1) Production path: weight-resident, bf16 MXU operands, f32 accumulation.
    y = jax.block_until_ready(jax.jit(mlp_forward)(x, w1, b1, w2, b2))
    assert y.shape == (B, T, C)
    assert jnp.allclose(y, y_ref, atol=5e-3, rtol=5e-2), "bf16 path mismatch"

    # 2) Bit-faithful f32 path (matches the PyTorch module's f32 semantics).
    y32 = jax.block_until_ready(
        jax.jit(partial(mlp_forward, mxu_dtype=None))(x, w1, b1, w2, b2))
    assert jnp.allclose(y32, y_ref, atol=1e-3, rtol=1e-2), "f32 path mismatch"

    # 3) Streaming (H-chunk reduction) path, forced, with several k steps.
    C2, H2 = 128, 512
    x2 = jax.random.normal(kx, (B, T, C2), dtype=jnp.float32)
    w1b = jax.random.normal(k1, (C2, H2), dtype=jnp.float32) * 0.02
    b1b = jax.random.normal(k2, (H2,), dtype=jnp.float32) * 0.02
    w2b = jax.random.normal(k3, (H2, C2), dtype=jnp.float32) * 0.02
    b2b = jax.random.normal(k4, (C2,), dtype=jnp.float32) * 0.02
    ys = jax.block_until_ready(
        jax.jit(partial(mlp_forward, mxu_dtype=None,
                        _force_streaming=True, _force_th=128))(
            x2, w1b, b1b, w2b, b2b))
    ys_ref = _ref_mlp(x2, w1b, b1b, w2b, b2b)
    assert jnp.allclose(ys, ys_ref, atol=1e-3, rtol=1e-2), "streaming mismatch"

    print("KERNEL_OK")
</pallas_src>

<mosaic_0001>
module attributes {stable_mosaic.version = 11 : i64} {
  func.func @_mlp_resident_kernel(%arg0: i32, %arg1: memref<16x32xbf16, #tpu.memory_space<vmem>>, %arg2: memref<32x128xbf16, #tpu.memory_space<vmem>>, %arg3: memref<1x128xf32, #tpu.memory_space<vmem>>, %arg4: memref<128x32xbf16, #tpu.memory_space<vmem>>, %arg5: memref<1x32xf32, #tpu.memory_space<vmem>>, %arg6: memref<16x32xf32, #tpu.memory_space<vmem>>) attributes {dimension_semantics = [#tpu.dimension_semantics<parallel>], iteration_bounds = array<i64: 1>, scalar_prefetch = 0 : i64, scratch_operands = 0 : i64, tpu.core_type = #tpu.core_type<tc>, window_params = [{transform_indices = @transform_0, window_bounds = array<i64: 16, 32>}, {pipeline_mode = #tpu.pipeline_mode<synchronous>, transform_indices = @transform_1, window_bounds = array<i64: 32, 128>}, {pipeline_mode = #tpu.pipeline_mode<synchronous>, transform_indices = @transform_2, window_bounds = array<i64: 1, 128>}, {pipeline_mode = #tpu.pipeline_mode<synchronous>, transform_indices = @transform_3, window_bounds = array<i64: 128, 32>}, {pipeline_mode = #tpu.pipeline_mode<synchronous>, transform_indices = @transform_4, window_bounds = array<i64: 1, 32>}, {transform_indices = @transform_5, window_bounds = array<i64: 16, 32>}]} {
    %c0 = arith.constant 0 : index
    %c0_0 = arith.constant 0 : index
    %0 = vector.load %arg1[%c0, %c0_0] : memref<16x32xbf16, #tpu.memory_space<vmem>>, vector<16x32xbf16>
    %cst = arith.constant 0.000000e+00 : f32
    %1 = vector.broadcast %cst : f32 to vector<16x32xf32>
    %c0_1 = arith.constant 0 : index
    %c0_2 = arith.constant 0 : index
    %2 = vector.load %arg2[%c0_1, %c0_2] : memref<32x128xbf16, #tpu.memory_space<vmem>>, vector<32x128xbf16>
    %cst_3 = arith.constant dense<0.000000e+00> : vector<16x128xf32>
    %3 = tpu.matmul %0, %2, %cst_3 {dimension_numbers = #tpu.dot_dimension_numbers<[1], [0], [0], [1], [0, 0, 1, 1], [], []>} : vector<16x32xbf16>, vector<32x128xbf16>, vector<16x128xf32> -> vector<16x128xf32>
    %c0_4 = arith.constant 0 : index
    %c0_5 = arith.constant 0 : index
    %4 = vector.load %arg3[%c0_4, %c0_5] : memref<1x128xf32, #tpu.memory_space<vmem>>, vector<1x128xf32>
    %5 = vector.broadcast %4 : vector<1x128xf32> to vector<16x128xf32>
    %6 = arith.addf %3, %5 : vector<16x128xf32>
    %cst_6 = arith.constant 5.000000e-01 : f32
    %7 = vector.broadcast %cst_6 : f32 to vector<16x128xf32>
    %8 = arith.mulf %7, %6 : vector<16x128xf32>
    %cst_7 = arith.constant 4.471500e-02 : f32
    %9 = vector.broadcast %cst_7 : f32 to vector<16x128xf32>
    %10 = arith.mulf %9, %6 : vector<16x128xf32>
    %11 = arith.mulf %10, %6 : vector<16x128xf32>
    %12 = arith.mulf %11, %6 : vector<16x128xf32>
    %13 = arith.addf %6, %12 : vector<16x128xf32>
    %cst_8 = arith.constant 0.797884583 : f32
    %14 = vector.broadcast %cst_8 : f32 to vector<16x128xf32>
    %15 = arith.mulf %14, %13 : vector<16x128xf32>
    %16 = math.tanh %15 : vector<16x128xf32>
    %cst_9 = arith.constant 1.000000e+00 : f32
    %17 = vector.broadcast %cst_9 : f32 to vector<16x128xf32>
    %18 = arith.addf %17, %16 : vector<16x128xf32>
    %19 = arith.mulf %8, %18 : vector<16x128xf32>
    %20 = arith.truncf %19 : vector<16x128xf32> to vector<16x128xbf16>
    %c0_10 = arith.constant 0 : index
    %c0_11 = arith.constant 0 : index
    %21 = vector.load %arg4[%c0_10, %c0_11] : memref<128x32xbf16, #tpu.memory_space<vmem>>, vector<128x32xbf16>
    %cst_12 = arith.constant dense<0.000000e+00> : vector<16x32xf32>
    %22 = tpu.matmul %20, %21, %cst_12 {dimension_numbers = #tpu.dot_dimension_numbers<[1], [0], [0], [1], [0, 0, 1, 1], [], []>} : vector<16x128xbf16>, vector<128x32xbf16>, vector<16x32xf32> -> vector<16x32xf32>
    %23 = arith.addf %1, %22 : vector<16x32xf32>
    %c0_13 = arith.constant 0 : index
    %c0_14 = arith.constant 0 : index
    %24 = vector.load %arg5[%c0_13, %c0_14] : memref<1x32xf32, #tpu.memory_space<vmem>>, vector<1x32xf32>
    %25 = vector.broadcast %24 : vector<1x32xf32> to vector<16x32xf32>
    %26 = arith.addf %23, %25 : vector<16x32xf32>
    %c0_15 = arith.constant 0 : index
    %c0_16 = arith.constant 0 : index
    %27 = vector.load %arg6[%c0_15, %c0_16] : memref<16x32xf32, #tpu.memory_space<vmem>>, vector<16x32xf32>
    tpu.vector_store %arg6[%c0_15, %c0_16], %26 {strides = array<i32>} : memref<16x32xf32, #tpu.memory_space<vmem>>, vector<16x32xf32>,
    return
  }
  func.func @transform_0(%arg0: i32) -> (i32, i32) {
    %c0_i32 = arith.constant 0 : i32
    %c0_i32_0 = arith.constant 0 : i32
    return %arg0, %c0_i32 : i32, i32
  }
  func.func @transform_1(%arg0: i32) -> (i32, i32) {
    %c0_i32 = arith.constant 0 : i32
    %c0_i32_0 = arith.constant 0 : i32
    %c0_i32_1 = arith.constant 0 : i32
    return %c0_i32, %c0_i32_0 : i32, i32
  }
  func.func @transform_2(%arg0: i32) -> (i32, i32) {
    %c0_i32 = arith.constant 0 : i32
    %c0_i32_0 = arith.constant 0 : i32
    %c0_i32_1 = arith.constant 0 : i32
    return %c0_i32, %c0_i32_0 : i32, i32
  }
  func.func @transform_3(%arg0: i32) -> (i32, i32) {
    %c0_i32 = arith.constant 0 : i32
    %c0_i32_0 = arith.constant 0 : i32
    %c0_i32_1 = arith.constant 0 : i32
    return %c0_i32, %c0_i32_0 : i32, i32
  }
  func.func @transform_4(%arg0: i32) -> (i32, i32) {
    %c0_i32 = arith.constant 0 : i32
    %c0_i32_0 = arith.constant 0 : i32
    %c0_i32_1 = arith.constant 0 : i32
    return %c0_i32, %c0_i32_0 : i32, i32
  }
  func.func @transform_5(%arg0: i32) -> (i32, i32) {
    %c0_i32 = arith.constant 0 : i32
    %c0_i32_0 = arith.constant 0 : i32
    return %arg0, %c0_i32 : i32, i32
  }
}

</mosaic_0001>

<bundles_post_ra>
// kernel: mlp_forward.1
= control target key start
LH: loop header
LB: loop body
LE: loop exit
PB: predicated region body
PF: predicated region fallthrough
CT: control target
= control target key end

     0   :  { %v344_v1 = vmov 0.0   ;;  %vm345_vm0 = vmmov 0   ;;  %vm52_vm1 = vcmask 261120   ;;  %s433_s0 = inlined_call_operand.vmem [shape: bf16[16,32], index: 0, kind: input, shape index: {}]   ;;  %s434_s1 = inlined_call_operand.vmem [shape: bf16[32,128], index: 1, kind: input, shape index: {}]   ;;  %s435_s2 = inlined_call_operand.vmem [shape: f32[1,128], index: 2, kind: input, shape index: {}]   ;;  %s436_s3 = inlined_call_operand.vmem [shape: bf16[128,32], index: 3, kind: input, shape index: {}]   ;;  %s437_s4 = inlined_call_operand.vmem [shape: f32[1,32], index: 4, kind: input, shape index: {}]   ;;  %s438_s5 = inlined_call_operand.hbm [shape: f32[16,32], index: 5, kind: output, shape index: {}]  }
   0x1   :  { %v305_v0 = vld [vmem:[%s434_s1] sm:$0xff]   ;;  %272 = vmatprep.subr.bf16.mxu0 %v344_v1  ;;  %280 = vmatprep.subr.bf16.mxu1 %v344_v1  ;;  %v306_v2 = vld [vmem:[%s434_s1 + $0x8] sm:$0xff]  }
   0x2   :  { %273 = vmatpush3.bf16.msra.mxu0 %v305_v0  ;;  %276 = vmatprep.mubr.msk.bf16.mxu0 %vm345_vm0, %v344_v1  ;;  %v307_v3 = vld [vmem:[%s433_s0] sm:$0xff]  }
   0x3   :  { %274 = vmatprep.subr.bf16.mxu0 %v344_v1  ;;  %296 = vmatprep.mubr.msk.bf16.mxu1 %vm345_vm0, %v344_v1 }
   0x6   :  { %275 = vmatpush3.bf16.msra.mxu0 %v306_v2 }
   0x7   :  { %10 = vsyncpa [#allocation3], 0  ;;  %v308_v4 = vld [vmem:[%s436_s3] sm:$0xff]   ;;  %v309_v5 = vld [vmem:[%s436_s3 + $0x8] sm:$0xff]   ;;  %s346_s15 = smov [#allocation2]  }
   0x8   :  { %281 = vmatpush3.bf16.msra.mxu1 %v308_v4  ;;  %v310_v6 = vld [vmem:[%s436_s3 + $0x10] sm:$0xff]   ;;  %v311_v7 = vld [vmem:[%s436_s3 + $0x18] sm:$0xff]   ;;  %v312_v8 = vld [vmem:[%s436_s3 + $0x20] sm:$0xff]   ;;  %s235_s16 = sshll.u32 %s346_s15, 4  ;;  %s236_s16 = int_to_ptr.vmem [resolvable:$true] %s235_s16 }
   0x9   :  { %277 = vmatmul.mubr.msk.bf16.vlgmr.msra.gmra.mrb[0].mxu0 %vm52_vm1, %v307_v3  ;;  %282 = vmatprep.subr.bf16.mxu1 %v344_v1  ;;  %v313_v9 = vld [vmem:[%s436_s3 + $0x28] sm:$0xff]   ;;  %v314_v10 = vld [vmem:[%s436_s3 + $0x30] sm:$0xff]   ;;  %v315_v11 = vld [vmem:[%s436_s3 + $0x38] sm:$0xff]   ;;  %s320_s17 = scalar_lea.vmem %s236_s16, 256  ;;  %p325_p1 = scmp.lt.s32.totalorder %s236_s16, %s236_s16 }
   0xa   :  { %v246_v12 = vld [vmem:[%s435_s2] ss:$0 sm:$0xff]  ;;  %p321_p0 = scmp.ne.s32.totalorder %s236_s16, %s320_s17  ;;  %p326_p2 = scmp.lt.s32.totalorder %s320_s17, %s320_s17 }
   0xb   :  { %v251_v38 = vld [vmem:[%s437_s4] ss:$0 sm:$0xff] }
   0xc   :  { %283 = vmatpush3.bf16.msra.mxu1 %v309_v5  ;;  %p327_p3 = por %p326_p2, %p325_p1 }
   0xd   :  { %284 = vmatprep.subr.bf16.mxu1 %v344_v1 }
   0xe   :  { %p328_p4 = pnand %p327_p3, %p321_p0 }
  0x10   :  { %285 = vmatpush3.bf16.msra.mxu1 %v310_v6 }
  0x11   :  { %286 = vmatprep.subr.bf16.mxu1 %v344_v1 }
  0x14   :  { %287 = vmatpush3.bf16.msra.mxu1 %v311_v7 }
  0x15   :  { %288 = vmatprep.subr.bf16.mxu1 %v344_v1 }
  0x18   :  { %289 = vmatpush3.bf16.msra.mxu1 %v312_v8 }
  0x19   :  { %290 = vmatprep.subr.bf16.mxu1 %v344_v1 }
  0x1c   :  { %291 = vmatpush3.bf16.msra.mxu1 %v313_v9 }
  0x1d   :  { %292 = vmatprep.subr.bf16.mxu1 %v344_v1 }
  0x20   :  { %293 = vmatpush3.bf16.msra.mxu1 %v314_v10 }
  0x21   :  { %294 = vmatprep.subr.bf16.mxu1 %v344_v1 }
  0x24   :  { %295 = vmatpush3.bf16.msra.mxu1 %v315_v11 }
  0xdc   :  { %v90_v13 = vpop.f32.mrb[0].mxu0 }
  0xdd   :  { %v91_v14 = vadd.f32 %v246_v12, %v90_v13  ;;  %v278_v15 = vpop.f32.mrb[1].mxu0 }
  0xde   :  { %v93_v16 = vpop.f32.mrb[2].mxu0 }
  0xdf   :  { %v99_v17 = vmul.f32 0.044715, %v91_v14  ;;  %v94_v18 = vadd.f32 %v246_v12, %v93_v16  ;;  %v279_v19 = vpop.f32.mrb[3].mxu0  ;;  %v97_v32 = vmul.f32 0.5, %v91_v14 }
  0xe1   :  { %v101_v20 = vmul.f32 %v99_v17, %v91_v14  ;;  %v100_v21 = vmul.f32 0.044715, %v94_v18  ;;  %v98_v33 = vmul.f32 0.5, %v94_v18 }
  0xe3   :  { %v103_v22 = vmul.f32 %v101_v20, %v91_v14  ;;  %v102_v23 = vmul.f32 %v100_v21, %v94_v18 }
  0xe5   :  { %v104_v24 = vmul.f32 %v102_v23, %v94_v18  ;;  %v105_v25 = vadd.f32 %v103_v22, %v91_v14 }
  0xe7   :  { %v106_v26 = vadd.f32 %v104_v24, %v94_v18  ;;  %v107_v27 = vmul.f32 0.7978846, %v105_v25 }
  0xe9   :  { %v108_v28 = vmul.f32 0.7978846, %v106_v26  ;;  %316 = vtanh.f32 %v107_v27 }
  0xeb   :  { %318 = vtanh.f32 %v108_v28 }
  0xf3   :  { %v317_v29 = vpop.eup %316 }
  0xf4   :  { %v111_v30 = vadd.f32 1.0, %v317_v29 }
  0xf5   :  { %v319_v31 = vpop.eup %318 }
  0xf6   :  { %v112_v34 = vadd.f32 1.0, %v319_v31  ;;  %v113_v35 = vmul.f32 %v111_v30, %v97_v32 }
  0xf8   :  { %v114_v36 = vmul.f32 %v112_v34, %v98_v33 }
  0xfa   :  { %v115_v37 = vpack.c.bf16 %v114_v36, %v113_v35 }
  0xfc   :  { %297 = vmatmul.mubr.bf16.vlgmr.msra.gmra.mrb[0].mxu1 %v115_v37 }
 0x1cf   :  { %v221_v39 = vpop.f32.mrb[0].mxu1 }
 0x1d0   :  { %v222_v40 = vadd.f32 %v251_v38, %v221_v39  ;;  %v298_v41 = vpop.f32.mrb[1].mxu1 }
 0x1d1   :  { %v224_v42 = vpop.f32.mrb[2].mxu1 }
 0x1d2   :  { %228 = vst.msk [vmem:[#allocation2] sm:$0xff] %vm52_vm1, %v222_v40  ;;  %v225_v43 = vadd.f32 %v251_v38, %v224_v42  ;;  %v299_v44 = vpop.f32.mrb[3].mxu1 }
 0x1d4   :  { %229 = vst.msk [vmem:[#allocation2 + $0x8] sm:$0xff] %vm52_vm1, %v225_v43 }
 0x1d5   :  { %331 = shalt.err (!%p328_p4)
}
 0x1d6   :  { %s332_s19 = scalar_lea.hbm %s438_s5, 256 }
 0x1d7   :  { %p333_p5 = scmp.ne.s32.totalorder %s438_s5, %s332_s19  ;;  %p336_p6 = scmp.lt.u32.totalorder %s332_s19, %s438_s5 }
 0x1d9   :  { %p338_p7 = pnand %p336_p6, %p333_p5 }
 0x1db   :  { %341 = shalt.err (!%p338_p7)
}
 0x1dc   :  { %s347_s24 = smov 128   ;;  %s348_s25 = smov 8  }
 0x1dd   :  { %241 = dma.vmem_to_hbm [thread:$0]  %s236_s16, 256, %s438_s5, [#allocation3], %s347_s24, %s347_s24, %s348_s25  }
 0x1de   :  { %342 = dma.done.wait [#allocation3], 256  }
 0x1df   :  { %343 = vsyncadd [#allocation3], 4294967040 }
 0x1e0   :  { %245 = vsyncpa [#allocation3], 1 }

</bundles_post_ra>
